<compile_context>
chip_gen: v6e
topology: v6e:2x2x1
jax: 0.10.0
libtpu: 0.0.40
codegen_flags: <defaults>
</compile_context>

<pallas_src>
import functools

import jax
import jax.numpy as jnp
from jax.experimental import pallas as pl
from jax.experimental.pallas import tpu as pltpu

_COMPUTE_DTYPE = jnp.bfloat16   # MXU input dtype; accumulators stay f32.


# ----------------------------------------------------------------------------
# Hardware-derived knobs
# ----------------------------------------------------------------------------

def _vmem_capacity_bytes():
    try:
        return int(pltpu.get_tpu_info().vmem_capacity_bytes)
    except Exception:                       # query unavailable: assume smallest (v7x)
        return 64 * 1024 * 1024


def _vmem_limit_bytes():
    # ~56 MiB ceiling on v7x (64 MiB physical), up to 100 MiB on v5e/v6e (128 MiB).
    cap = _vmem_capacity_bytes()
    return int(min(cap - 8 * 1024 * 1024, 100 * 1024 * 1024))


def _default_row_block():
    return 256 if _vmem_capacity_bytes() <= 64 * 1024 * 1024 else 512


# ----------------------------------------------------------------------------
# In-kernel helpers
# ----------------------------------------------------------------------------

def _layernorm(x, g, b, eps):
    mu = jnp.mean(x, axis=-1, keepdims=True)
    xc = x - mu
    var = jnp.mean(xc * xc, axis=-1, keepdims=True)
    return xc * jax.lax.rsqrt(var + eps) * g + b


def _mxu(x):
    return x.astype(_COMPUTE_DTYPE)


# ----------------------------------------------------------------------------
# Pallas kernels
# ----------------------------------------------------------------------------

def _ln_qkv_kernel(x_ref, g_ref, b_ref, w_ref, bias_ref, q_ref, k_ref, v_ref, *, eps):
    """LayerNorm + packed QKV projection: one read of x, one (D,3D) MXU matmul.
    The attention scale is pre-folded into the Q columns of w/b at pack time.
    Outputs are bf16 (only ever consumed as MXU inputs)."""
    xn = _layernorm(x_ref[...], g_ref[...], b_ref[...], eps)
    y = jnp.dot(_mxu(xn), w_ref[...], preferred_element_type=jnp.float32) + bias_ref[...]
    y = y.astype(q_ref.dtype)
    d = q_ref.shape[-1]
    q_ref[...] = y[:, :d]
    k_ref[...] = y[:, d:2 * d]
    v_ref[...] = y[:, 2 * d:3 * d]


def _out_res_ln_q_kernel(attn_ref, res_ref, wo_ref, bo_ref, g_ref, b_ref,
                         wq_ref, bq_ref, t_ref, q_ref, *, eps):
    """Self-attn epilogue fused with cross-attn Q prologue:
    t = res + attn @ Wo + bo ; q = LN2(t) @ Wq + bq (Wq pre-scaled)."""
    y = jnp.dot(attn_ref[...], wo_ref[...], preferred_element_type=jnp.float32) + bo_ref[...]
    t = res_ref[...] + y
    t_ref[...] = t
    xn = _layernorm(t, g_ref[...], b_ref[...], eps)
    q_ref[...] = (jnp.dot(_mxu(xn), wq_ref[...], preferred_element_type=jnp.float32)
                  + bq_ref[...]).astype(q_ref.dtype)


def _kv_proj_kernel(v_ref, wk_ref, bk_ref, wv_ref, bv_ref, k_ref, vo_ref):
    """Cross-attention memory projections when pos is None: K = v@Wk, V = v@Wv."""
    vb = _mxu(v_ref[...])
    k_ref[...] = (jnp.dot(vb, wk_ref[...], preferred_element_type=jnp.float32)
                  + bk_ref[...]).astype(k_ref.dtype)
    vo_ref[...] = (jnp.dot(vb, wv_ref[...], preferred_element_type=jnp.float32)
                   + bv_ref[...]).astype(vo_ref.dtype)


def _posadd_kv_proj_kernel(v_ref, pos_ref, wk_ref, bk_ref, wv_ref, bv_ref, k_ref, vo_ref):
    """Cross-attention memory projections: K = (v + pos) @ Wk, V = v @ Wv.
    The positional add is fused into the K-projection prologue."""
    v = v_ref[...]
    k_ref[...] = (jnp.dot(_mxu(v + pos_ref[...]), wk_ref[...],
                          preferred_element_type=jnp.float32) + bk_ref[...]).astype(k_ref.dtype)
    vo_ref[...] = (jnp.dot(_mxu(v), wv_ref[...],
                           preferred_element_type=jnp.float32) + bv_ref[...]).astype(vo_ref.dtype)


def _out_res_ffn_kernel(attn_ref, res_ref, wo_ref, bo_ref, g_ref, b_ref,
                        w1_ref, b1_ref, w2_ref, b2_ref, o_ref, *, eps):
    """Cross-attn epilogue fused with the FFN block:
    t = res + attn @ Wo + bo ; out = t + W2(relu(W1(LN3(t)))).
    The (tile_rows, dim_ff) hidden activation lives only in VMEM/vregs."""
    y = jnp.dot(attn_ref[...], wo_ref[...], preferred_element_type=jnp.float32) + bo_ref[...]
    t = res_ref[...] + y
    xn = _layernorm(t, g_ref[...], b_ref[...], eps)
    h = jnp.dot(_mxu(xn), w1_ref[...], preferred_element_type=jnp.float32) + b1_ref[...]
    h = jnp.maximum(h, 0.0)
    y2 = jnp.dot(_mxu(h), w2_ref[...], preferred_element_type=jnp.float32) + b2_ref[...]
    o_ref[...] = (t + y2).astype(o_ref.dtype)


def _attn_core_kernel(q_ref, k_ref, v_ref, o_ref, *, nhead):
    """One (q-row-tile, full memory) block of attention. Heads are sliced in-kernel
    from the lane dimension (no external split/merge transposes); the output is
    re-concatenated along lanes and stored once as a lane-dense (tq, D) slab.
    Scale is pre-folded into the Q projection weights. Softmax stays f32; the
    normalization uses the EUP approximate reciprocal (free bundle slot).
    TODO(synk): v7x — tile Lk with an online-softmax (flash) accumulator instead of
    materializing (tq, Lk) scores, and cast (s - m) to bf16 before exp on v6e/v7x."""
    q = q_ref[...]                          # (tq, D)  bf16, already scaled
    k = k_ref[...]                          # (Lk, D)  bf16
    v = v_ref[...]                          # (Lk, D)  bf16
    hd = q.shape[-1] // nhead
    outs = []
    for h in range(nhead):                  # static unroll; nhead is small
        sl = slice(h * hd, (h + 1) * hd)
        s = jax.lax.dot_general(q[:, sl], k[:, sl], (((1,), (1,)), ((), ())),
                                preferred_element_type=jnp.float32)   # q @ k^T
        m = jnp.max(s, axis=-1, keepdims=True)
        p = jnp.exp(s - m)
        denom = jnp.sum(p, axis=-1, keepdims=True)
        o = jnp.dot(p.astype(v.dtype), v[:, sl], preferred_element_type=jnp.float32)
        outs.append(o * pl.reciprocal(denom, approx=True))
    o_ref[...] = jnp.concatenate(outs, axis=-1).astype(o_ref.dtype)


# ----------------------------------------------------------------------------
# pallas_call wrappers
# ----------------------------------------------------------------------------

def _row_tile(m, target, granularity=16):
    """Largest row tile <= target that divides m and is a multiple of 16 sublanes
    (satisfies both the f32 (8,128) and bf16 (16,128) minimum block tiling).
    Falls back to a single full-m block (always legal: equals the array dim).
    TODO(synk): handle ragged m with a cdiv grid + masked final tile instead."""
    if m <= target:
        return m
    t = (min(target, m) // granularity) * granularity
    while t >= granularity:
        if m % t == 0:
            return t
        t -= granularity
    return m


def _full_spec(a, buffered):
    """BlockSpec for a grid-invariant weight/bias: full block, and (when supported)
    single buffering so Pallas does not waste VMEM double-buffering constants."""
    if buffered:
        return pl.BlockSpec(a.shape, lambda i: (0, 0), pipeline_mode=pl.Buffered(1))
    return pl.BlockSpec(a.shape, lambda i: (0, 0))


def _row_call(kernel, row_args, full_args, outs, row_block, vmem_limit):
    """Launch a row-wise kernel tiled over M (software-pipelined, 'parallel' grid).

    row_args : 2-D (M, Ki) activations, tiled over rows.
    full_args: weights / biases / LN params, full lane-dense blocks, single-buffered.
    outs     : list of (columns, dtype) for each (M, columns) output.
    """
    m = row_args[0].shape[0]
    tm = _row_tile(m, row_block)
    grid = (m // tm,)
    row_specs = [pl.BlockSpec((tm, a.shape[1]), lambda i: (i, 0)) for a in row_args]
    out_specs = tuple(pl.BlockSpec((tm, w), lambda i: (i, 0)) for w, _ in outs)
    out_shape = tuple(jax.ShapeDtypeStruct((m, w), dt) for w, dt in outs)
    if len(outs) == 1:
        out_specs, out_shape = out_specs[0], out_shape[0]

    def build(buffered):
        return pl.pallas_call(
            kernel,
            grid=grid,
            in_specs=row_specs + [_full_spec(a, buffered) for a in full_args],
            out_specs=out_specs,
            out_shape=out_shape,
            compiler_params=pltpu.CompilerParams(
                dimension_semantics=("parallel",),
                vmem_limit_bytes=vmem_limit),
        )

    try:
        return build(True)(*row_args, *full_args)
    except Exception:
        # Fallback for JAX builds where BlockSpec(pipeline_mode=pl.Buffered(1)) is
        # unsupported for pallas_call pipelining; semantics are identical.
        return build(False)(*row_args, *full_args)


def attention_core(q2d, k2d, v2d, bsz, lq, lk, nhead, *, q_block, vmem_limit):
    """q2d: (B*Lq, D); k2d/v2d: (B*Lk, D), all batch-major bf16 slabs.
    2-D parallel grid (batch, q-row tiles): gives v7x both-TensorCore sharding and
    DMA/compute overlap even for small B. K/V blocks are grid-invariant along the
    q-tile axis (last/fastest), so they are not re-copied between q tiles.
    Output is already head-merged: (B*Lq, D) bf16, lane-dense."""
    d = q2d.shape[1]
    tq = _row_tile(lq, q_block)
    nq = lq // tq
    return pl.pallas_call(
        functools.partial(_attn_core_kernel, nhead=nhead),
        grid=(bsz, nq),
        in_specs=[
            pl.BlockSpec((tq, d), lambda b, qi: (b * nq + qi, 0)),
            pl.BlockSpec((lk, d), lambda b, qi: (b, 0)),
            pl.BlockSpec((lk, d), lambda b, qi: (b, 0)),
        ],
        out_specs=pl.BlockSpec((tq, d), lambda b, qi: (b * nq + qi, 0)),
        out_shape=jax.ShapeDtypeStruct((bsz * lq, d), _COMPUTE_DTYPE),
        compiler_params=pltpu.CompilerParams(
            dimension_semantics=("parallel", "parallel"),
            vmem_limit_bytes=vmem_limit),
    )(q2d, k2d, v2d)


# ----------------------------------------------------------------------------
# Parameter packing (one-time: transpose, pack QKV, fold scale, cast MXU to bf16)
# ----------------------------------------------------------------------------

def pack_decoder_params(params, nhead, compute_dtype=_COMPUTE_DTYPE):
    d = params["norm1_w"].shape[0]
    scale = float(d // nhead) ** -0.5

    def mha(p):
        w_in = p["in_proj_weight"]            # (3D, D), PyTorch layout
        b_in = p["in_proj_bias"]
        # Fold the attention scale into the Q projection (removes a VPU pass over Q
        # in the attention kernel): (x@Wq + bq)*scale == x@(Wq*scale) + bq*scale.
        qcol_scale = jnp.concatenate([jnp.full((d,), scale, jnp.float32),
                                      jnp.ones((2 * d,), jnp.float32)])
        w_qkv = w_in.T * qcol_scale[None, :]                     # (D, 3D) packed
        b_qkv = b_in.reshape(1, 3 * d) * qcol_scale[None, :]
        return {
            "w_qkv": w_qkv.astype(compute_dtype),
            "b_qkv": b_qkv.astype(jnp.float32),
            "w_q": (w_in[:d].T * scale).astype(compute_dtype),
            "b_q": (b_in[:d].reshape(1, d) * scale).astype(jnp.float32),
            "w_k": w_in[d:2 * d].T.astype(compute_dtype),
            "b_k": b_in[d:2 * d].reshape(1, d).astype(jnp.float32),
            "w_v": w_in[2 * d:].T.astype(compute_dtype),
            "b_v": b_in[2 * d:].reshape(1, d).astype(jnp.float32),
            "w_o": p["out_proj_weight"].T.astype(compute_dtype),
            "b_o": p["out_proj_bias"].reshape(1, d).astype(jnp.float32),
        }

    f = params["linear1_w"].shape[0]
    return {
        "self_attn": mha(params["self_attn"]),
        "cross_attn": mha(params["multihead_attn"]),
        "w1": params["linear1_w"].T.astype(compute_dtype),        # (D, F)
        "b1": params["linear1_b"].reshape(1, f).astype(jnp.float32),
        "w2": params["linear2_w"].T.astype(compute_dtype),        # (F, D)
        "b2": params["linear2_b"].reshape(1, d).astype(jnp.float32),
        "ln1_g": params["norm1_w"].reshape(1, d).astype(jnp.float32),
        "ln1_b": params["norm1_b"].reshape(1, d).astype(jnp.float32),
        "ln2_g": params["norm2_w"].reshape(1, d).astype(jnp.float32),
        "ln2_b": params["norm2_b"].reshape(1, d).astype(jnp.float32),
        "ln3_g": params["norm3_w"].reshape(1, d).astype(jnp.float32),
        "ln3_b": params["norm3_b"].reshape(1, d).astype(jnp.float32),
    }


# ----------------------------------------------------------------------------
# TransformerDecoderLayer.forward_pre (eval mode: dropout = identity)
# ----------------------------------------------------------------------------

def transformer_decoder_layer(t_output, v_output, params, nhead, pos=None,
                              eps=1e-5, row_block=None, attn_q_block=256):
    """t_output: (Lt, B, D); v_output, pos: (Lv, B, D). Returns (Lt, B, D) f32."""
    Lt, B, D = t_output.shape
    Lv = v_output.shape[0]
    p = pack_decoder_params(params, nhead)
    vmem_limit = _vmem_limit_bytes()
    if row_block is None:
        row_block = _default_row_block()      # 256 on v7x (64 MiB VMEM), else 512

    # One layout change at the layer boundary: (L, B, D) -> batch-major rows (B*L, D)
    # so per-batch attention blocks are contiguous and all later reshapes are free.
    t = t_output.transpose(1, 0, 2).reshape(B * Lt, D).astype(jnp.float32)
    v2d = v_output.transpose(1, 0, 2).reshape(B * Lv, D)

    sa, ca = p["self_attn"], p["cross_attn"]

    # 1. LN1 + packed QKV projection (bf16 outputs, scale folded into Q).
    q, k, vv = _row_call(
        functools.partial(_ln_qkv_kernel, eps=eps),
        [t], [p["ln1_g"], p["ln1_b"], sa["w_qkv"], sa["b_qkv"]],
        [(D, _COMPUTE_DTYPE)] * 3, row_block, vmem_limit)

    # 2. Self-attention core (heads sliced in-kernel; lane-dense (B*Lt, D) output).
    attn = attention_core(q, k, vv, B, Lt, Lt, nhead,
                          q_block=attn_q_block, vmem_limit=vmem_limit)

    # 3. out_proj + residual + LN2 + cross-attn Q projection, fused.
    t, qc = _row_call(
        functools.partial(_out_res_ln_q_kernel, eps=eps),
        [attn, t],
        [sa["w_o"], sa["b_o"], p["ln2_g"], p["ln2_b"], ca["w_q"], ca["b_q"]],
        [(D, jnp.float32), (D, _COMPUTE_DTYPE)], row_block, vmem_limit)

    # 4. Cross-attn memory K/V projections (specialized when pos is None — no zero
    #    tensor is allocated, DMA'd or added).
    if pos is None:
        kc, vc = _row_call(
            _kv_proj_kernel,
            [v2d], [ca["w_k"], ca["b_k"], ca["w_v"], ca["b_v"]],
            [(D, _COMPUTE_DTYPE)] * 2, row_block, vmem_limit)
    else:
        pos2d = pos.transpose(1, 0, 2).reshape(B * Lv, D)
        kc, vc = _row_call(
            _posadd_kv_proj_kernel,
            [v2d, pos2d], [ca["w_k"], ca["b_k"], ca["w_v"], ca["b_v"]],
            [(D, _COMPUTE_DTYPE)] * 2, row_block, vmem_limit)

    # 5. Cross-attention core.
    attn = attention_core(qc, kc, vc, B, Lt, Lv, nhead,
                          q_block=attn_q_block, vmem_limit=vmem_limit)

    # 6. out_proj + residual + LN3 + linear1 + ReLU + linear2 + residual, fused.
    t = _row_call(
        functools.partial(_out_res_ffn_kernel, eps=eps),
        [attn, t],
        [ca["w_o"], ca["b_o"], p["ln3_g"], p["ln3_b"],
         p["w1"], p["b1"], p["w2"], p["b2"]],
        [(D, jnp.float32)], row_block, vmem_limit)

    return t.reshape(B, Lt, D).transpose(1, 0, 2)


# ----------------------------------------------------------------------------
# Pure-JAX f32 reference (for a sanity check)
# ----------------------------------------------------------------------------

def _ref_ln(x, g, b, eps=1e-5):
    mu = jnp.mean(x, -1, keepdims=True)
    var = jnp.mean((x - mu) ** 2, -1, keepdims=True)
    return (x - mu) * jax.lax.rsqrt(var + eps) * g + b


def _ref_mha(q, k, v, p, nhead):
    Lq, B, D = q.shape
    Lk = k.shape[0]
    hd = D // nhead
    wq, wk, wv = p["in_proj_weight"][:D], p["in_proj_weight"][D:2*D], p["in_proj_weight"][2*D:]
    bq, bk, bv = p["in_proj_bias"][:D], p["in_proj_bias"][D:2*D], p["in_proj_bias"][2*D:]
    Q = (q @ wq.T + bq).reshape(Lq, B * nhead, hd).transpose(1, 0, 2)
    K = (k @ wk.T + bk).reshape(Lk, B * nhead, hd).transpose(1, 0, 2)
    V = (v @ wv.T + bv).reshape(Lk, B * nhead, hd).transpose(1, 0, 2)
    s = jnp.einsum("bqd,bkd->bqk", Q, K) * (hd ** -0.5)
    pr = jax.nn.softmax(s, axis=-1)
    o = jnp.einsum("bqk,bkd->bqd", pr, V).transpose(1, 0, 2).reshape(Lq, B, D)
    return o @ p["out_proj_weight"].T + p["out_proj_bias"]


def _ref_layer(t, v, params, nhead, pos):
    t2 = _ref_ln(t, params["norm1_w"], params["norm1_b"])
    t = t + _ref_mha(t2, t2, t2, params["self_attn"], nhead)
    Qt = _ref_ln(t, params["norm2_w"], params["norm2_b"])
    kv = v if pos is None else v + pos
    t = t + _ref_mha(Qt, kv, v, params["multihead_attn"], nhead)
    t2 = _ref_ln(t, params["norm3_w"], params["norm3_b"])
    h = jnp.maximum(t2 @ params["linear1_w"].T + params["linear1_b"], 0.0)
    return t + (h @ params["linear2_w"].T + params["linear2_b"])


# ----------------------------------------------------------------------------
# Main
# ----------------------------------------------------------------------------

def make_params(key, d_model, nhead, dim_feedforward):
    ks = jax.random.split(key, 12)
    def mha_params(k1, k2, k3, k4):
        return {
            "in_proj_weight": 0.05 * jax.random.normal(k1, (3 * d_model, d_model), jnp.float32),
            "in_proj_bias": 0.05 * jax.random.normal(k2, (3 * d_model,), jnp.float32),
            "out_proj_weight": 0.05 * jax.random.normal(k3, (d_model, d_model), jnp.float32),
            "out_proj_bias": 0.05 * jax.random.normal(k4, (d_model,), jnp.float32),
        }
    return {
        "self_attn": mha_params(ks[0], ks[1], ks[2], ks[3]),
        "multihead_attn": mha_params(ks[4], ks[5], ks[6], ks[7]),
        "linear1_w": 0.05 * jax.random.normal(ks[8], (dim_feedforward, d_model), jnp.float32),
        "linear1_b": 0.05 * jax.random.normal(ks[9], (dim_feedforward,), jnp.float32),
        "linear2_w": 0.05 * jax.random.normal(ks[10], (d_model, dim_feedforward), jnp.float32),
        "linear2_b": 0.05 * jax.random.normal(ks[11], (d_model,), jnp.float32),
        # LayerNorm default init (weight=1, bias=0), matching nn.LayerNorm.__init__
        "norm1_w": jnp.ones((d_model,), jnp.float32),
        "norm1_b": jnp.zeros((d_model,), jnp.float32),
        "norm2_w": jnp.ones((d_model,), jnp.float32),
        "norm2_b": jnp.zeros((d_model,), jnp.float32),
        "norm3_w": jnp.ones((d_model,), jnp.float32),
        "norm3_b": jnp.zeros((d_model,), jnp.float32),
    }


if __name__ == "__main__":
    d_model, nhead, dim_feedforward = 32, 4, 64
    Lt, Lv, B = 16, 16, 2            # (seq, batch, d_model) layout

    key = jax.random.PRNGKey(0)
    k_t, k_v, k_pos, k_p = jax.random.split(key, 4)
    t_output = jax.random.normal(k_t, (Lt, B, d_model), jnp.float32)
    v_output = jax.random.normal(k_v, (Lv, B, d_model), jnp.float32)
    pos = jax.random.normal(k_pos, (Lv, B, d_model), jnp.float32)
    params = make_params(k_p, d_model, nhead, dim_feedforward)

    # Default row tiling (whole-M tiles at this toy size).
    out = transformer_decoder_layer(t_output, v_output, params, nhead, pos=pos)
    out = jax.block_until_ready(out)

    # Small row tiles to exercise the multi-step pipelined grid path as well.
    out_tiled = transformer_decoder_layer(t_output, v_output, params, nhead,
                                          pos=pos, row_block=16)
    out_tiled = jax.block_until_ready(out_tiled)

    # pos=None path exercises the specialized K/V projection kernel.
    out_nopos = transformer_decoder_layer(t_output, v_output, params, nhead, pos=None)
    out_nopos = jax.block_until_ready(out_nopos)

    ref = _ref_layer(t_output, v_output, params, nhead, pos)
    ref_nopos = _ref_layer(t_output, v_output, params, nhead, None)

    assert out.shape == (Lt, B, d_model)
    # bf16 MXU inputs / bf16 intermediates with f32 accumulation and residuals vs a
    # pure-f32 reference: documented tolerance.
    assert jnp.allclose(out, ref, atol=2e-2, rtol=2e-2), "mismatch vs pure-JAX reference"
    assert jnp.allclose(out_tiled, ref, atol=2e-2, rtol=2e-2), "tiled-grid mismatch vs reference"
    assert jnp.allclose(out_nopos, ref_nopos, atol=2e-2, rtol=2e-2), "pos=None mismatch vs reference"

    print("KERNEL_OK")
</pallas_src>

<mosaic_0001>
module attributes {stable_mosaic.version = 11 : i64} {
  func.func @_ln_qkv_kernel(%arg0: i32, %arg1: memref<32x32xf32, #tpu.memory_space<vmem>>, %arg2: memref<1x32xf32, #tpu.memory_space<vmem>>, %arg3: memref<1x32xf32, #tpu.memory_space<vmem>>, %arg4: memref<32x96xbf16, #tpu.memory_space<vmem>>, %arg5: memref<1x96xf32, #tpu.memory_space<vmem>>, %arg6: memref<32x32xbf16, #tpu.memory_space<vmem>>, %arg7: memref<32x32xbf16, #tpu.memory_space<vmem>>, %arg8: memref<32x32xbf16, #tpu.memory_space<vmem>>) attributes {dimension_semantics = [#tpu.dimension_semantics<parallel>], iteration_bounds = array<i64: 1>, scalar_prefetch = 0 : i64, scratch_operands = 0 : i64, tpu.core_type = #tpu.core_type<tc>, window_params = [{transform_indices = @transform_0, window_bounds = array<i64: 32, 32>}, {pipeline_mode = #tpu.pipeline_mode<synchronous>, transform_indices = @transform_1, window_bounds = array<i64: 1, 32>}, {pipeline_mode = #tpu.pipeline_mode<synchronous>, transform_indices = @transform_2, window_bounds = array<i64: 1, 32>}, {pipeline_mode = #tpu.pipeline_mode<synchronous>, transform_indices = @transform_3, window_bounds = array<i64: 32, 96>}, {pipeline_mode = #tpu.pipeline_mode<synchronous>, transform_indices = @transform_4, window_bounds = array<i64: 1, 96>}, {transform_indices = @transform_5, window_bounds = array<i64: 32, 32>}, {transform_indices = @transform_6, window_bounds = array<i64: 32, 32>}, {transform_indices = @transform_7, window_bounds = array<i64: 32, 32>}]} {
    %c0 = arith.constant 0 : index
    %c0_0 = arith.constant 0 : index
    %0 = vector.load %arg1[%c0, %c0_0] : memref<32x32xf32, #tpu.memory_space<vmem>>, vector<32x32xf32>
    %c0_1 = arith.constant 0 : index
    %c0_2 = arith.constant 0 : index
    %1 = vector.load %arg2[%c0_1, %c0_2] : memref<1x32xf32, #tpu.memory_space<vmem>>, vector<1x32xf32>
    %c0_3 = arith.constant 0 : index
    %c0_4 = arith.constant 0 : index
    %2 = vector.load %arg3[%c0_3, %c0_4] : memref<1x32xf32, #tpu.memory_space<vmem>>, vector<1x32xf32>
    %cst = arith.constant dense<0.000000e+00> : vector<32xf32>
    %3 = vector.multi_reduction <add>, %0, %cst [1] : vector<32x32xf32> to vector<32xf32>
    %4 = vector.shape_cast %3 : vector<32xf32> to vector<32x1xf32>
    %cst_5 = arith.constant 3.200000e+01 : f32
    %5 = vector.broadcast %cst_5 : f32 to vector<32x1xf32>
    %6 = arith.divf %4, %5 : vector<32x1xf32>
    %7 = vector.broadcast %6 : vector<32x1xf32> to vector<32x32xf32>
    %8 = arith.subf %0, %7 : vector<32x32xf32>
    %9 = arith.mulf %8, %8 : vector<32x32xf32>
    %cst_6 = arith.constant dense<0.000000e+00> : vector<32xf32>
    %10 = vector.multi_reduction <add>, %9, %cst_6 [1] : vector<32x32xf32> to vector<32xf32>
    %11 = vector.shape_cast %10 : vector<32xf32> to vector<32x1xf32>
    %cst_7 = arith.constant 3.200000e+01 : f32
    %12 = vector.broadcast %cst_7 : f32 to vector<32x1xf32>
    %13 = arith.divf %11, %12 : vector<32x1xf32>
    %cst_8 = arith.constant 9.99999974E-6 : f32
    %14 = vector.broadcast %cst_8 : f32 to vector<32x1xf32>
    %15 = arith.addf %13, %14 : vector<32x1xf32>
    %16 = math.rsqrt %15 : vector<32x1xf32>
    %17 = vector.broadcast %16 : vector<32x1xf32> to vector<32x32xf32>
    %18 = arith.mulf %8, %17 : vector<32x32xf32>
    %19 = vector.broadcast %1 : vector<1x32xf32> to vector<32x32xf32>
    %20 = arith.mulf %18, %19 : vector<32x32xf32>
    %21 = vector.broadcast %2 : vector<1x32xf32> to vector<32x32xf32>
    %22 = arith.addf %20, %21 : vector<32x32xf32>
    %23 = arith.truncf %22 : vector<32x32xf32> to vector<32x32xbf16>
    %c0_9 = arith.constant 0 : index
    %c0_10 = arith.constant 0 : index
    %24 = vector.load %arg4[%c0_9, %c0_10] : memref<32x96xbf16, #tpu.memory_space<vmem>>, vector<32x96xbf16>
    %cst_11 = arith.constant dense<0.000000e+00> : vector<32x96xf32>
    %25 = tpu.matmul %23, %24, %cst_11 {dimension_numbers = #tpu.dot_dimension_numbers<[1], [0], [0], [1], [0, 0, 1, 1], [], []>} : vector<32x32xbf16>, vector<32x96xbf16>, vector<32x96xf32> -> vector<32x96xf32>
    %c0_12 = arith.constant 0 : index
    %c0_13 = arith.constant 0 : index
    %26 = vector.load %arg5[%c0_12, %c0_13] : memref<1x96xf32, #tpu.memory_space<vmem>>, vector<1x96xf32>
    %27 = vector.broadcast %26 : vector<1x96xf32> to vector<32x96xf32>
    %28 = arith.addf %25, %27 : vector<32x96xf32>
    %29 = arith.truncf %28 : vector<32x96xf32> to vector<32x96xbf16>
    %30 = vector.extract_strided_slice %29 {offsets = [0, 0], sizes = [32, 32], strides = [1, 1]} : vector<32x96xbf16> to vector<32x32xbf16>
    %c0_14 = arith.constant 0 : index
    %c0_15 = arith.constant 0 : index
    %31 = vector.load %arg6[%c0_14, %c0_15] : memref<32x32xbf16, #tpu.memory_space<vmem>>, vector<32x32xbf16>
    tpu.vector_store %arg6[%c0_14, %c0_15], %30 {strides = array<i32>} : memref<32x32xbf16, #tpu.memory_space<vmem>>, vector<32x32xbf16>,
    %32 = vector.extract_strided_slice %29 {offsets = [0, 32], sizes = [32, 32], strides = [1, 1]} : vector<32x96xbf16> to vector<32x32xbf16>
    %c0_16 = arith.constant 0 : index
    %c0_17 = arith.constant 0 : index
    %33 = vector.load %arg7[%c0_16, %c0_17] : memref<32x32xbf16, #tpu.memory_space<vmem>>, vector<32x32xbf16>
    tpu.vector_store %arg7[%c0_16, %c0_17], %32 {strides = array<i32>} : memref<32x32xbf16, #tpu.memory_space<vmem>>, vector<32x32xbf16>,
    %34 = vector.extract_strided_slice %29 {offsets = [0, 64], sizes = [32, 32], strides = [1, 1]} : vector<32x96xbf16> to vector<32x32xbf16>
    %c0_18 = arith.constant 0 : index
    %c0_19 = arith.constant 0 : index
    %35 = vector.load %arg8[%c0_18, %c0_19] : memref<32x32xbf16, #tpu.memory_space<vmem>>, vector<32x32xbf16>
    tpu.vector_store %arg8[%c0_18, %c0_19], %34 {strides = array<i32>} : memref<32x32xbf16, #tpu.memory_space<vmem>>, vector<32x32xbf16>,
    return
  }
  func.func @transform_0(%arg0: i32) -> (i32, i32) {
    %c0_i32 = arith.constant 0 : i32
    %c0_i32_0 = arith.constant 0 : i32
    return %arg0, %c0_i32 : i32, i32
  }
  func.func @transform_1(%arg0: i32) -> (i32, i32) {
    %c0_i32 = arith.constant 0 : i32
    %c0_i32_0 = arith.constant 0 : i32
    %c0_i32_1 = arith.constant 0 : i32
    return %c0_i32, %c0_i32_0 : i32, i32
  }
  func.func @transform_2(%arg0: i32) -> (i32, i32) {
    %c0_i32 = arith.constant 0 : i32
    %c0_i32_0 = arith.constant 0 : i32
    %c0_i32_1 = arith.constant 0 : i32
    return %c0_i32, %c0_i32_0 : i32, i32
  }
  func.func @transform_3(%arg0: i32) -> (i32, i32) {
    %c0_i32 = arith.constant 0 : i32
    %c0_i32_0 = arith.constant 0 : i32
    %c0_i32_1 = arith.constant 0 : i32
    return %c0_i32, %c0_i32_0 : i32, i32
  }
  func.func @transform_4(%arg0: i32) -> (i32, i32) {
    %c0_i32 = arith.constant 0 : i32
    %c0_i32_0 = arith.constant 0 : i32
    %c0_i32_1 = arith.constant 0 : i32
    return %c0_i32, %c0_i32_0 : i32, i32
  }
  func.func @transform_5(%arg0: i32) -> (i32, i32) {
    %c0_i32 = arith.constant 0 : i32
    %c0_i32_0 = arith.constant 0 : i32
    return %arg0, %c0_i32 : i32, i32
  }
  func.func @transform_6(%arg0: i32) -> (i32, i32) {
    %c0_i32 = arith.constant 0 : i32
    %c0_i32_0 = arith.constant 0 : i32
    return %arg0, %c0_i32 : i32, i32
  }
  func.func @transform_7(%arg0: i32) -> (i32, i32) {
    %c0_i32 = arith.constant 0 : i32
    %c0_i32_0 = arith.constant 0 : i32
    return %arg0, %c0_i32 : i32, i32
  }
}

module attributes {stable_mosaic.version = 11 : i64} {
  func.func @_ln_qkv_kernel(%arg0: i32, %arg1: memref<32x32xf32, #tpu.memory_space<vmem>>, %arg2: memref<1x32xf32, #tpu.memory_space<vmem>>, %arg3: memref<1x32xf32, #tpu.memory_space<vmem>>, %arg4: memref<32x96xbf16, #tpu.memory_space<vmem>>, %arg5: memref<1x96xf32, #tpu.memory_space<vmem>>, %arg6: memref<32x32xbf16, #tpu.memory_space<vmem>>, %arg7: memref<32x32xbf16, #tpu.memory_space<vmem>>, %arg8: memref<32x32xbf16, #tpu.memory_space<vmem>>) attributes {dimension_semantics = [#tpu.dimension_semantics<parallel>], iteration_bounds = array<i64: 1>, scalar_prefetch = 0 : i64, scratch_operands = 0 : i64, tpu.core_type = #tpu.core_type<tc>, window_params = [{transform_indices = @transform_0, window_bounds = array<i64: 32, 32>}, {pipeline_mode = #tpu.pipeline_mode<synchronous>, transform_indices = @transform_1, window_bounds = array<i64: 1, 32>}, {pipeline_mode = #tpu.pipeline_mode<synchronous>, transform_indices = @transform_2, window_bounds = array<i64: 1, 32>}, {pipeline_mode = #tpu.pipeline_mode<synchronous>, transform_indices = @transform_3, window_bounds = array<i64: 32, 96>}, {pipeline_mode = #tpu.pipeline_mode<synchronous>, transform_indices = @transform_4, window_bounds = array<i64: 1, 96>}, {transform_indices = @transform_5, window_bounds = array<i64: 32, 32>}, {transform_indices = @transform_6, window_bounds = array<i64: 32, 32>}, {transform_indices = @transform_7, window_bounds = array<i64: 32, 32>}]} {
    %c0 = arith.constant 0 : index
    %c0_0 = arith.constant 0 : index
    %0 = vector.load %arg1[%c0, %c0_0] : memref<32x32xf32, #tpu.memory_space<vmem>>, vector<32x32xf32>
    %c0_1 = arith.constant 0 : index
    %c0_2 = arith.constant 0 : index
    %1 = vector.load %arg2[%c0_1, %c0_2] : memref<1x32xf32, #tpu.memory_space<vmem>>, vector<1x32xf32>
    %c0_3 = arith.constant 0 : index
    %c0_4 = arith.constant 0 : index
    %2 = vector.load %arg3[%c0_3, %c0_4] : memref<1x32xf32, #tpu.memory_space<vmem>>, vector<1x32xf32>
    %cst = arith.constant dense<0.000000e+00> : vector<32xf32>
    %3 = vector.multi_reduction <add>, %0, %cst [1] : vector<32x32xf32> to vector<32xf32>
    %4 = vector.shape_cast %3 : vector<32xf32> to vector<32x1xf32>
    %cst_5 = arith.constant 3.200000e+01 : f32
    %5 = vector.broadcast %cst_5 : f32 to vector<32x1xf32>
    %6 = arith.divf %4, %5 : vector<32x1xf32>
    %7 = vector.broadcast %6 : vector<32x1xf32> to vector<32x32xf32>
    %8 = arith.subf %0, %7 : vector<32x32xf32>
    %9 = arith.mulf %8, %8 : vector<32x32xf32>
    %cst_6 = arith.constant dense<0.000000e+00> : vector<32xf32>
    %10 = vector.multi_reduction <add>, %9, %cst_6 [1] : vector<32x32xf32> to vector<32xf32>
    %11 = vector.shape_cast %10 : vector<32xf32> to vector<32x1xf32>
    %cst_7 = arith.constant 3.200000e+01 : f32
    %12 = vector.broadcast %cst_7 : f32 to vector<32x1xf32>
    %13 = arith.divf %11, %12 : vector<32x1xf32>
    %cst_8 = arith.constant 9.99999974E-6 : f32
    %14 = vector.broadcast %cst_8 : f32 to vector<32x1xf32>
    %15 = arith.addf %13, %14 : vector<32x1xf32>
    %16 = math.rsqrt %15 : vector<32x1xf32>
    %17 = vector.broadcast %16 : vector<32x1xf32> to vector<32x32xf32>
    %18 = arith.mulf %8, %17 : vector<32x32xf32>
    %19 = vector.broadcast %1 : vector<1x32xf32> to vector<32x32xf32>
    %20 = arith.mulf %18, %19 : vector<32x32xf32>
    %21 = vector.broadcast %2 : vector<1x32xf32> to vector<32x32xf32>
    %22 = arith.addf %20, %21 : vector<32x32xf32>
    %23 = arith.truncf %22 : vector<32x32xf32> to vector<32x32xbf16>
    %c0_9 = arith.constant 0 : index
    %c0_10 = arith.constant 0 : index
    %24 = vector.load %arg4[%c0_9, %c0_10] : memref<32x96xbf16, #tpu.memory_space<vmem>>, vector<32x96xbf16>
    %cst_11 = arith.constant dense<0.000000e+00> : vector<32x96xf32>
    %25 = tpu.matmul %23, %24, %cst_11 {dimension_numbers = #tpu.dot_dimension_numbers<[1], [0], [0], [1], [0, 0, 1, 1], [], []>} : vector<32x32xbf16>, vector<32x96xbf16>, vector<32x96xf32> -> vector<32x96xf32>
    %c0_12 = arith.constant 0 : index
    %c0_13 = arith.constant 0 : index
    %26 = vector.load %arg5[%c0_12, %c0_13] : memref<1x96xf32, #tpu.memory_space<vmem>>, vector<1x96xf32>
    %27 = vector.broadcast %26 : vector<1x96xf32> to vector<32x96xf32>
    %28 = arith.addf %25, %27 : vector<32x96xf32>
    %29 = arith.truncf %28 : vector<32x96xf32> to vector<32x96xbf16>
    %30 = vector.extract_strided_slice %29 {offsets = [0, 0], sizes = [32, 32], strides = [1, 1]} : vector<32x96xbf16> to vector<32x32xbf16>
    %c0_14 = arith.constant 0 : index
    %c0_15 = arith.constant 0 : index
    %31 = vector.load %arg6[%c0_14, %c0_15] : memref<32x32xbf16, #tpu.memory_space<vmem>>, vector<32x32xbf16>
    tpu.vector_store %arg6[%c0_14, %c0_15], %30 {strides = array<i32>} : memref<32x32xbf16, #tpu.memory_space<vmem>>, vector<32x32xbf16>,
    %32 = vector.extract_strided_slice %29 {offsets = [0, 32], sizes = [32, 32], strides = [1, 1]} : vector<32x96xbf16> to vector<32x32xbf16>
    %c0_16 = arith.constant 0 : index
    %c0_17 = arith.constant 0 : index
    %33 = vector.load %arg7[%c0_16, %c0_17] : memref<32x32xbf16, #tpu.memory_space<vmem>>, vector<32x32xbf16>
    tpu.vector_store %arg7[%c0_16, %c0_17], %32 {strides = array<i32>} : memref<32x32xbf16, #tpu.memory_space<vmem>>, vector<32x32xbf16>,
    %34 = vector.extract_strided_slice %29 {offsets = [0, 64], sizes = [32, 32], strides = [1, 1]} : vector<32x96xbf16> to vector<32x32xbf16>
    %c0_18 = arith.constant 0 : index
    %c0_19 = arith.constant 0 : index
    %35 = vector.load %arg8[%c0_18, %c0_19] : memref<32x32xbf16, #tpu.memory_space<vmem>>, vector<32x32xbf16>
    tpu.vector_store %arg8[%c0_18, %c0_19], %34 {strides = array<i32>} : memref<32x32xbf16, #tpu.memory_space<vmem>>, vector<32x32xbf16>,
    return
  }
  func.func @transform_0(%arg0: i32) -> (i32, i32) {
    %c0_i32 = arith.constant 0 : i32
    %c0_i32_0 = arith.constant 0 : i32
    return %arg0, %c0_i32 : i32, i32
  }
  func.func @transform_1(%arg0: i32) -> (i32, i32) {
    %c0_i32 = arith.constant 0 : i32
    %c0_i32_0 = arith.constant 0 : i32
    %c0_i32_1 = arith.constant 0 : i32
    return %c0_i32, %c0_i32_0 : i32, i32
  }
  func.func @transform_2(%arg0: i32) -> (i32, i32) {
    %c0_i32 = arith.constant 0 : i32
    %c0_i32_0 = arith.constant 0 : i32
    %c0_i32_1 = arith.constant 0 : i32
    return %c0_i32, %c0_i32_0 : i32, i32
  }
  func.func @transform_3(%arg0: i32) -> (i32, i32) {
    %c0_i32 = arith.constant 0 : i32
    %c0_i32_0 = arith.constant 0 : i32
    %c0_i32_1 = arith.constant 0 : i32
    return %c0_i32, %c0_i32_0 : i32, i32
  }
  func.func @transform_4(%arg0: i32) -> (i32, i32) {
    %c0_i32 = arith.constant 0 : i32
    %c0_i32_0 = arith.constant 0 : i32
    %c0_i32_1 = arith.constant 0 : i32
    return %c0_i32, %c0_i32_0 : i32, i32
  }
  func.func @transform_5(%arg0: i32) -> (i32, i32) {
    %c0_i32 = arith.constant 0 : i32
    %c0_i32_0 = arith.constant 0 : i32
    return %arg0, %c0_i32 : i32, i32
  }
  func.func @transform_6(%arg0: i32) -> (i32, i32) {
    %c0_i32 = arith.constant 0 : i32
    %c0_i32_0 = arith.constant 0 : i32
    return %arg0, %c0_i32 : i32, i32
  }
  func.func @transform_7(%arg0: i32) -> (i32, i32) {
    %c0_i32 = arith.constant 0 : i32
    %c0_i32_0 = arith.constant 0 : i32
    return %arg0, %c0_i32 : i32, i32
  }
}

</mosaic_0001>

<bundles_post_ra>
// kernel: tpu_custom_call.1
= control target key start
LH: loop header
LB: loop body
LE: loop exit
PB: predicated region body
PF: predicated region fallthrough
CT: control target
= control target key end

     0   :  { %13 = vsyncpa [#allocation3], 0  ;;  %s583_s0 = inlined_call_operand.hbm [shape: f32[32,32], index: 0, kind: input, shape index: {}]   ;;  %s584_s1 = inlined_call_operand.vmem [shape: f32[1,32], index: 1, kind: input, shape index: {}]   ;;  %s585_s2 = inlined_call_operand.vmem [shape: f32[1,32], index: 2, kind: input, shape index: {}]   ;;  %s586_s3 = inlined_call_operand.hbm [shape: bf16[32,96], index: 3, kind: input, shape index: {}]   ;;  %s587_s4 = inlined_call_operand.vmem [shape: f32[1,96], index: 4, kind: input, shape index: {}]   ;;  %s588_s5 = inlined_call_operand.hbm [shape: bf16[32,32], index: 5, kind: output, shape index: {0}]   ;;  %s589_s6 = inlined_call_operand.hbm [shape: bf16[32,32], index: 6, kind: output, shape index: {1}]   ;;  %s590_s7 = inlined_call_operand.hbm [shape: bf16[32,32], index: 7, kind: output, shape index: {2}]  }
   0x1   :  { %14 = vsyncpa [#allocation6], 0 }
   0x2   :  { %15 = vsyncpa [#allocation4], 0 }
   0x3   :  { %16 = vsyncpa [#allocation9], 0  ;;  %s471_s24 = smov [#allocation2]  }
   0x4   :  { %s22_s25 = sshll.u32 %s471_s24, 4  ;;  %s23_s25 = int_to_ptr.vmem [resolvable:$true] %s22_s25 }
   0x5   :  { %s371_s26 = scalar_lea.vmem %s23_s25, 512  ;;  %p376_p1 = scmp.lt.s32.totalorder %s23_s25, %s23_s25 }
   0x6   :  { %p372_p0 = scmp.ne.s32.totalorder %s23_s25, %s371_s26  ;;  %p377_p2 = scmp.lt.s32.totalorder %s371_s26, %s371_s26 }
   0x8   :  { %p378_p3 = por %p377_p2, %p376_p1 }
   0xa   :  { %p379_p4 = pnand %p378_p3, %p372_p0 }
   0xc   :  { %382 = shalt.err (!%p379_p4)
}
   0xd   :  { %s472_s27 = smov 128   ;;  %s473_s28 = smov 8  }
   0xe   :  { %28 = dma.hbm_to_vmem [thread:$0]  %s583_s0, 512, %s23_s25, [#allocation3], %s472_s27, %s472_s27, %s473_s28  }
   0xf   :  { %s474_s8 = smov [#allocation5]  }
  0x10   :  { %s38_s9 = sshll.u32 %s474_s8, 4  ;;  %s39_s9 = int_to_ptr.vmem [resolvable:$true] %s38_s9 }
  0x11   :  { %s391_s10 = scalar_lea.vmem %s39_s9, 256  ;;  %p396_p6 = scmp.lt.s32.totalorder %s39_s9, %s39_s9 }
  0x12   :  { %p392_p5 = scmp.ne.s32.totalorder %s39_s9, %s391_s10  ;;  %p397_p7 = scmp.lt.s32.totalorder %s391_s10, %s391_s10 }
  0x14   :  { %p398_p8 = por %p397_p7, %p396_p6 }
  0x16   :  { %p399_p9 = pnand %p398_p8, %p392_p5 }
  0x18   :  { %402 = shalt.err (!%p399_p9)
}
  0x19   :  { %s475_s11 = smov 64   ;;  %s476_s12 = smov 4  }
  0x1a   :  { %44 = dma.hbm_to_vmem [thread:$0]  %s586_s3, 256, %s39_s9, [#allocation6], %s475_s11, %s475_s11, %s476_s12  }
  0x1b   :  { %463 = dma.done.wait [#allocation3], 512  }
  0x1c   :  { %464 = vsyncadd [#allocation3], 4294966784 }
  0x1d   :  { %465 = dma.done.wait [#allocation6], 256  }
  0x1e   :  { %466 = vsyncadd [#allocation6], 4294967040  ;;  %vm60_vm0 = vcmask 261120   ;;  %v54_v0 = vld [vmem:[#allocation2] sm:$0xff]  ;;  %v56_v1 = vld [vmem:[#allocation2 + $0x10] sm:$0xff]  ;;  %vm230_vm1 = vcmask 257024  }
  0x1f   :  { %v55_v2 = vld [vmem:[#allocation2 + $0x8] sm:$0xff]  ;;  %v61_v3 = vsel %vm60_vm0, %v54_v0, 0.0  ;;  %v67_v4 = vsel %vm60_vm0, %v56_v1, 0.0  ;;  %v57_v5 = vld [vmem:[#allocation2 + $0x18] sm:$0xff]  ;;  %v354_v29 = vld [vmem:[#allocation5] sm:$0xff]  }
  0x20   :  { %62 = vadd.xlane.f32.xlu0 %v61_v3  ;;  %68 = vadd.xlane.f32.xlu1 %v67_v4  ;;  %v64_v6 = vsel %vm60_vm0, %v55_v2, 0.0  ;;  %v70_v7 = vsel %vm60_vm0, %v57_v5, 0.0  ;;  %v353_v28 = vld [vmem:[#allocation5 + $0x8] sm:$0xff]   ;;  %v316_v44 = vld [vmem:[%s584_s1] ss:$0 sm:$0xff] }
  0x21   :  { %335 = vmatprep.subr.bf16.mxu0 %v353_v28  ;;  %v317_v49 = vld [vmem:[%s585_s2] ss:$0 sm:$0xff]  ;;  %s477_s2 = smov 96  }
  0x22   :  { %336 = vmatpush3.bf16.msra.mxu0 %v353_v28  ;;  %v318_v62 = vld [vmem:[%s587_s4] ss:$0 sm:$0xff]  ;;  %s478_s4 = smov [#allocation7]  }
  0x23   :  { %337 = vmatprep.subr.bf16.mxu0 %v354_v29  ;;  %s272_s18 = sshll.u32 %s478_s4, 4  ;;  %s273_s18 = int_to_ptr.vmem [resolvable:$true] %s272_s18 }
  0x24   :  { %65 = vadd.xlane.f32.xlu0 %v64_v6  ;;  %71 = vadd.xlane.f32.xlu1 %v70_v7  ;;  %s403_s19 = scalar_lea.vmem %s273_s18, 256  ;;  %p408_p11 = scmp.lt.s32.totalorder %s273_s18, %s273_s18 }
  0x25   :  { %p404_p10 = scmp.ne.s32.totalorder %s273_s18, %s403_s19  ;;  %p409_p12 = scmp.lt.s32.totalorder %s403_s19, %s403_s19 }
  0x26   :  { %338 = vmatpush3.bf16.msra.mxu0 %v354_v29 }
  0x27   :  { %p410_p13 = por %p409_p12, %p408_p11 }
  0x29   :  { %p411_p0 = pnand %p410_p13, %p404_p10 }
  0xa9   :  { %v63_v8 = vpop.xlane.xlu0 %62  ;;  %v69_v9 = vpop.xlane.xlu1 %68 }
  0xaa   :  { %v74_v10 = vmul.f32 0.03125, %v63_v8  ;;  %v76_v11 = vmul.f32 0.03125, %v69_v9 }
  0xac   :  { %v78_v12 = vsub.f32 %v54_v0, %v74_v10  ;;  %v80_v13 = vsub.f32 %v56_v1, %v76_v11 }
  0xad   :  { %v66_v14 = vpop.xlane.xlu0 %65  ;;  %v72_v15 = vpop.xlane.xlu1 %71 }
  0xae   :  { %v75_v16 = vmul.f32 0.03125, %v66_v14  ;;  %v77_v17 = vmul.f32 0.03125, %v72_v15  ;;  %v82_v18 = vmul.f32 %v78_v12, %v78_v12  ;;  %v84_v19 = vmul.f32 %v80_v13, %v80_v13 }
  0xb0   :  { %v79_v20 = vsub.f32 %v55_v2, %v75_v16  ;;  %v81_v21 = vsub.f32 %v57_v5, %v77_v17  ;;  %v86_v22 = vsel %vm60_vm0, %v82_v18, 0.0  ;;  %v92_v23 = vsel %vm60_vm0, %v84_v19, 0.0 }
  0xb1   :  { %87 = vadd.xlane.f32.xlu0 %v86_v22 }
  0xb2   :  { %v83_v24 = vmul.f32 %v79_v20, %v79_v20  ;;  %v85_v25 = vmul.f32 %v81_v21, %v81_v21 }
  0xb4   :  { %v89_v26 = vsel %vm60_vm0, %v83_v24, 0.0  ;;  %v95_v27 = vsel %vm60_vm0, %v85_v25, 0.0 }
  0xb5   :  { %93 = vadd.xlane.f32.xlu0 %v92_v23  ;;  %90 = vadd.xlane.f32.xlu1 %v89_v26 }
  0xb9   :  { %96 = vadd.xlane.f32.xlu1 %v95_v27 }
 0x13a   :  { %v88_v30 = vpop.xlane.xlu0 %87 }
 0x13b   :  { %v98_v31 = vmul.f32 0.03125, %v88_v30 }
 0x13d   :  { %v102_v32 = vadd.f32 1e-05, %v98_v31 }
 0x13e   :  { %v91_v33 = vpop.xlane.xlu1 %90  ;;  %v94_v34 = vpop.xlane.xlu0 %93 }
 0x13f   :  { %355 = vrsqrt.f32 %v102_v32  ;;  %v99_v35 = vmul.f32 0.03125, %v91_v33  ;;  %v100_v36 = vmul.f32 0.03125, %v94_v34 }
 0x141   :  { %v103_v37 = vadd.f32 1e-05, %v99_v35  ;;  %v104_v38 = vadd.f32 1e-05, %v100_v36 }
 0x142   :  { %v97_v39 = vpop.xlane.xlu1 %96 }
 0x143   :  { %357 = vrsqrt.f32 %v103_v37  ;;  %v101_v40 = vmul.f32 0.03125, %v97_v39 }
 0x144   :  { %359 = vrsqrt.f32 %v104_v38 }
 0x145   :  { %v105_v41 = vadd.f32 1e-05, %v101_v40 }
 0x147   :  { %361 = vrsqrt.f32 %v105_v41 }
 0x14c   :  { %v356_v42 = vpop.eup %355 }
 0x14d   :  { %v110_v43 = vmul.f32 %v356_v42, %v78_v12 }
 0x14f   :  { %v120_v48 = vmul.f32 %v316_v44, %v110_v43 }
 0x150   :  { %v358_v45 = vpop.eup %357 }
 0x151   :  { %v360_v46 = vpop.eup %359  ;;  %v111_v47 = vmul.f32 %v358_v45, %v79_v20  ;;  %v130_v53 = vadd.f32 %v317_v49, %v120_v48 }
 0x152   :  { %v112_v50 = vmul.f32 %v360_v46, %v80_v13 }
 0x153   :  { %v121_v51 = vmul.f32 %v316_v44, %v111_v47 }
 0x154   :  { %v362_v52 = vpop.eup %361  ;;  %v122_v56 = vmul.f32 %v316_v44, %v112_v50 }
 0x155   :  { %v131_v54 = vadd.f32 %v317_v49, %v121_v51  ;;  %v113_v55 = vmul.f32 %v362_v52, %v81_v21 }
 0x156   :  { %v132_v59 = vadd.f32 %v317_v49, %v122_v56 }
 0x157   :  { %v134_v57 = vpack.c.bf16 %v131_v54, %v130_v53  ;;  %v123_v58 = vmul.f32 %v316_v44, %v113_v55 }
 0x159   :  { %339 = vmatprep.mubr.msk.bf16.mxu0 %vm60_vm0, %v134_v57  ;;  %v133_v60 = vadd.f32 %v317_v49, %v123_v58 }
 0x15b   :  { %v135_v61 = vpack.c.bf16 %v133_v60, %v132_v59 }
 0x15d   :  { %340 = vmatmul.mubr.msk.bf16.vlgmr.msra.gmra.mxu0 %vm60_vm0, %v135_v61 }
 0x21d   :  { %v341_v63 = vpop.f32.mrf.mxu0 }
 0x21e   :  { %v208_v0 = vadd.f32 %v341_v63, %v318_v62 }
 0x21f   :  { %v199_v1 = vpop.f32.mrf.mxu0 }
 0x220   :  { %v329_v2 = vpack.c.bf16 %v208_v0, %v208_v0  ;;  %v200_v3 = vadd.f32 %v318_v62, %v199_v1 }
 0x221   :  { %v342_v4 = vpop.f32.mrf.mxu0 }
 0x222   :  { %233 = vst.msk [vmem:[#allocation7 + $0x8] sm:$0xf] %vm230_vm1, %v329_v2  ;;  %v327_v5 = vpack.c.bf16 %v200_v3, %v200_v3  ;;  %v211_v6 = vadd.f32 %v342_v4, %v318_v62  ;;  %239 = vrot.lane.b32.xlu1 %v329_v2, %s477_s2 }
 0x223   :  { %v202_v7 = vpop.f32.mrf.mxu0 }
 0x224   :  { %231 = vst.msk [vmem:[#allocation7] sm:$0xf] %vm230_vm1, %v327_v5  ;;  %v330_v8 = vpack.c.bf16 %v211_v6, %v211_v6  ;;  %v203_v9 = vadd.f32 %v318_v62, %v202_v7  ;;  %235 = vrot.lane.b32.xlu0 %v327_v5, %s477_s2 }
 0x226   :  { %234 = vst.msk [vmem:[#allocation7 + $0xc] sm:$0xf] %vm230_vm1, %v330_v8  ;;  %v328_v10 = vpack.c.bf16 %v203_v9, %v203_v9  ;;  %241 = vrot.lane.b32.xlu1 %v330_v8, %s477_s2 }
 0x228   :  { %232 = vst.msk [vmem:[#allocation7 + $0x4] sm:$0xf] %vm230_vm1, %v328_v10  ;;  %251 = vrot.lane.b32.xlu0 %v327_v5, %s475_s11 }
 0x229   :  { %414 = shalt.err (!%p411_p0)
}
 0x22a   :  { %278 = dma.vmem_to_hbm [thread:$0]  %s273_s18, 256, %s588_s5, [#allocation4], %s475_s11, %s475_s11, %s476_s12  }
 0x22b   :  { %237 = vrot.lane.b32.xlu1 %v328_v10, %s477_s2  ;;  %s479_s22 = smov [#allocation8]  }
 0x22c   :  { %255 = vrot.lane.b32.xlu0 %v329_v2, %s475_s11  ;;  %s284_s23 = sshll.u32 %s479_s22, 4  ;;  %s285_s23 = int_to_ptr.vmem [resolvable:$true] %s284_s23 }
 0x22d   :  { %s423_s5 = scalar_lea.vmem %s285_s23, 256  ;;  %p428_p2 = scmp.lt.s32.totalorder %s285_s23, %s285_s23 }
 0x22e   :  { %p424_p1 = scmp.ne.s32.totalorder %s285_s23, %s423_s5  ;;  %p429_p3 = scmp.lt.s32.totalorder %s423_s5, %s423_s5 }
 0x22f   :  { %253 = vrot.lane.b32.xlu1 %v328_v10, %s475_s11 }
 0x230   :  { %p430_p4 = por %p429_p3, %p428_p2 }
 0x232   :  { %p431_p5 = pnand %p430_p4, %p424_p1 }
 0x233   :  { %257 = vrot.lane.b32.xlu1 %v330_v8, %s475_s11 }
 0x294   :  { %v240_v11 = vpop.permute.xlu1 %239 }
 0x295   :  { %249 = vst.msk [vmem:[#allocation8 + $0x8] sm:$0xf] %vm230_vm1, %v240_v11 }
 0x296   :  { %v236_v12 = vpop.permute.xlu0 %235 }
 0x297   :  { %247 = vst.msk [vmem:[#allocation8] sm:$0xf] %vm230_vm1, %v236_v12 }
 0x298   :  { %v242_v13 = vpop.permute.xlu1 %241 }
 0x299   :  { %250 = vst.msk [vmem:[#allocation8 + $0xc] sm:$0xf] %vm230_vm1, %v242_v13 }
 0x29a   :  { %v252_v14 = vpop.permute.xlu0 %251 }
 0x29b   :  { %263 = vst.msk [vmem:[#allocation10] sm:$0xf] %vm230_vm1, %v252_v14 }
 0x29d   :  { %v238_v15 = vpop.permute.xlu1 %237 }
 0x29e   :  { %248 = vst.msk [vmem:[#allocation8 + $0x4] sm:$0xf] %vm230_vm1, %v238_v15  ;;  %v256_v16 = vpop.permute.xlu0 %255 }
 0x29f   :  { %434 = shalt.err (!%p431_p5)
}
 0x2a0   :  { %290 = dma.vmem_to_hbm [thread:$0]  %s285_s23, 256, %s589_s6, [#allocation9], %s475_s11, %s475_s11, %s476_s12   ;;  %265 = vst.msk [vmem:[#allocation10 + $0x8] sm:$0xf] %vm230_vm1, %v256_v16 }
 0x2a1   :  { %v254_v17 = vpop.permute.xlu1 %253  ;;  %s480_s26 = smov [#allocation10]  }
 0x2a2   :  { %s296_s27 = sshll.u32 %s480_s26, 4  ;;  %264 = vst.msk [vmem:[#allocation10 + $0x4] sm:$0xf] %vm230_vm1, %v254_v17  ;;  %s297_s27 = int_to_ptr.vmem [resolvable:$true] %s296_s27 }
 0x2a3   :  { %s443_s28 = scalar_lea.vmem %s297_s27, 256  ;;  %p448_p7 = scmp.lt.s32.totalorder %s297_s27, %s297_s27 }
 0x2a4   :  { %p444_p6 = scmp.ne.s32.totalorder %s297_s27, %s443_s28  ;;  %p449_p8 = scmp.lt.s32.totalorder %s443_s28, %s443_s28 }
 0x2a5   :  { %v258_v18 = vpop.permute.xlu1 %257 }
 0x2a6   :  { %266 = vst.msk [vmem:[#allocation10 + $0xc] sm:$0xf] %vm230_vm1, %v258_v18  ;;  %p450_p9 = por %p449_p8, %p448_p7 }
 0x2a8   :  { %p451_p10 = pnand %p450_p9, %p444_p6 }
 0x2aa   :  { %454 = shalt.err (!%p451_p10)
}
 0x2ab   :  { %302 = dma.vmem_to_hbm [thread:$0]  %s297_s27, 256, %s590_s7, [#allocation9], %s475_s11, %s475_s11, %s476_s12  }
 0x2ac   :  { %467 = dma.done.wait [#allocation4], 256  }
 0x2ad   :  { %468 = vsyncadd [#allocation4], 4294967040 }
 0x2ae   :  { %469 = dma.done.wait [#allocation9], 512  }
 0x2af   :  { %470 = vsyncadd [#allocation9], 4294966784 }
 0x2b0   :  { %312 = vsyncpa [#allocation3], 1 }
 0x2b1   :  { %313 = vsyncpa [#allocation6], 1 }
 0x2b2   :  { %314 = vsyncpa [#allocation4], 1 }
 0x2b3   :  { %315 = vsyncpa [#allocation9], 1 }

// kernel: tpu_custom_call.1
= control target key start
LH: loop header
LB: loop body
LE: loop exit
PB: predicated region body
PF: predicated region fallthrough
CT: control target
= control target key end

     0   :  { %13 = vsyncpa [#allocation3], 0  ;;  %s583_s0 = inlined_call_operand.hbm [shape: f32[32,32], index: 0, kind: input, shape index: {}]   ;;  %s584_s1 = inlined_call_operand.vmem [shape: f32[1,32], index: 1, kind: input, shape index: {}]   ;;  %s585_s2 = inlined_call_operand.vmem [shape: f32[1,32], index: 2, kind: input, shape index: {}]   ;;  %s586_s3 = inlined_call_operand.hbm [shape: bf16[32,96], index: 3, kind: input, shape index: {}]   ;;  %s587_s4 = inlined_call_operand.vmem [shape: f32[1,96], index: 4, kind: input, shape index: {}]   ;;  %s588_s5 = inlined_call_operand.hbm [shape: bf16[32,32], index: 5, kind: output, shape index: {0}]   ;;  %s589_s6 = inlined_call_operand.hbm [shape: bf16[32,32], index: 6, kind: output, shape index: {1}]   ;;  %s590_s7 = inlined_call_operand.hbm [shape: bf16[32,32], index: 7, kind: output, shape index: {2}]  }
   0x1   :  { %14 = vsyncpa [#allocation6], 0 }
   0x2   :  { %15 = vsyncpa [#allocation4], 0 }
   0x3   :  { %16 = vsyncpa [#allocation9], 0  ;;  %s471_s24 = smov [#allocation2]  }
   0x4   :  { %s22_s25 = sshll.u32 %s471_s24, 4  ;;  %s23_s25 = int_to_ptr.vmem [resolvable:$true] %s22_s25 }
   0x5   :  { %s371_s26 = scalar_lea.vmem %s23_s25, 512  ;;  %p376_p1 = scmp.lt.s32.totalorder %s23_s25, %s23_s25 }
   0x6   :  { %p372_p0 = scmp.ne.s32.totalorder %s23_s25, %s371_s26  ;;  %p377_p2 = scmp.lt.s32.totalorder %s371_s26, %s371_s26 }
   0x8   :  { %p378_p3 = por %p377_p2, %p376_p1 }
   0xa   :  { %p379_p4 = pnand %p378_p3, %p372_p0 }
   0xc   :  { %382 = shalt.err (!%p379_p4)
}
   0xd   :  { %s472_s27 = smov 128   ;;  %s473_s28 = smov 8  }
   0xe   :  { %28 = dma.hbm_to_vmem [thread:$0]  %s583_s0, 512, %s23_s25, [#allocation3], %s472_s27, %s472_s27, %s473_s28  }
   0xf   :  { %s474_s8 = smov [#allocation5]  }
  0x10   :  { %s38_s9 = sshll.u32 %s474_s8, 4  ;;  %s39_s9 = int_to_ptr.vmem [resolvable:$true] %s38_s9 }
  0x11   :  { %s391_s10 = scalar_lea.vmem %s39_s9, 256  ;;  %p396_p6 = scmp.lt.s32.totalorder %s39_s9, %s39_s9 }
  0x12   :  { %p392_p5 = scmp.ne.s32.totalorder %s39_s9, %s391_s10  ;;  %p397_p7 = scmp.lt.s32.totalorder %s391_s10, %s391_s10 }
  0x14   :  { %p398_p8 = por %p397_p7, %p396_p6 }
  0x16   :  { %p399_p9 = pnand %p398_p8, %p392_p5 }
  0x18   :  { %402 = shalt.err (!%p399_p9)
}
  0x19   :  { %s475_s11 = smov 64   ;;  %s476_s12 = smov 4  }
  0x1a   :  { %44 = dma.hbm_to_vmem [thread:$0]  %s586_s3, 256, %s39_s9, [#allocation6], %s475_s11, %s475_s11, %s476_s12  }
  0x1b   :  { %463 = dma.done.wait [#allocation3], 512  }
  0x1c   :  { %464 = vsyncadd [#allocation3], 4294966784 }
  0x1d   :  { %465 = dma.done.wait [#allocation6], 256  }
  0x1e   :  { %466 = vsyncadd [#allocation6], 4294967040  ;;  %vm60_vm0 = vcmask 261120   ;;  %v54_v0 = vld [vmem:[#allocation2] sm:$0xff]  ;;  %v56_v1 = vld [vmem:[#allocation2 + $0x10] sm:$0xff]  ;;  %vm230_vm1 = vcmask 257024  }
  0x1f   :  { %v55_v2 = vld [vmem:[#allocation2 + $0x8] sm:$0xff]  ;;  %v61_v3 = vsel %vm60_vm0, %v54_v0, 0.0  ;;  %v67_v4 = vsel %vm60_vm0, %v56_v1, 0.0  ;;  %v57_v5 = vld [vmem:[#allocation2 + $0x18] sm:$0xff]  ;;  %v354_v29 = vld [vmem:[#allocation5] sm:$0xff]  }
  0x20   :  { %62 = vadd.xlane.f32.xlu0 %v61_v3  ;;  %68 = vadd.xlane.f32.xlu1 %v67_v4  ;;  %v64_v6 = vsel %vm60_vm0, %v55_v2, 0.0  ;;  %v70_v7 = vsel %vm60_vm0, %v57_v5, 0.0  ;;  %v353_v28 = vld [vmem:[#allocation5 + $0x8] sm:$0xff]   ;;  %v316_v44 = vld [vmem:[%s584_s1] ss:$0 sm:$0xff] }
  0x21   :  { %335 = vmatprep.subr.bf16.mxu0 %v353_v28  ;;  %v317_v49 = vld [vmem:[%s585_s2] ss:$0 sm:$0xff]  ;;  %s477_s2 = smov 96  }
  0x22   :  { %336 = vmatpush3.bf16.msra.mxu0 %v353_v28  ;;  %v318_v62 = vld [vmem:[%s587_s4] ss:$0 sm:$0xff]  ;;  %s478_s4 = smov [#allocation7]  }
  0x23   :  { %337 = vmatprep.subr.bf16.mxu0 %v354_v29  ;;  %s272_s18 = sshll.u32 %s478_s4, 4  ;;  %s273_s18 = int_to_ptr.vmem [resolvable:$true] %s272_s18 }
  0x24   :  { %65 = vadd.xlane.f32.xlu0 %v64_v6  ;;  %71 = vadd.xlane.f32.xlu1 %v70_v7  ;;  %s403_s19 = scalar_lea.vmem %s273_s18, 256  ;;  %p408_p11 = scmp.lt.s32.totalorder %s273_s18, %s273_s18 }
  0x25   :  { %p404_p10 = scmp.ne.s32.totalorder %s273_s18, %s403_s19  ;;  %p409_p12 = scmp.lt.s32.totalorder %s403_s19, %s403_s19 }
  0x26   :  { %338 = vmatpush3.bf16.msra.mxu0 %v354_v29 }
  0x27   :  { %p410_p13 = por %p409_p12, %p408_p11 }
  0x29   :  { %p411_p0 = pnand %p410_p13, %p404_p10 }
  0xa9   :  { %v63_v8 = vpop.xlane.xlu0 %62  ;;  %v69_v9 = vpop.xlane.xlu1 %68 }
  0xaa   :  { %v74_v10 = vmul.f32 0.03125, %v63_v8  ;;  %v76_v11 = vmul.f32 0.03125, %v69_v9 }
  0xac   :  { %v78_v12 = vsub.f32 %v54_v0, %v74_v10  ;;  %v80_v13 = vsub.f32 %v56_v1, %v76_v11 }
  0xad   :  { %v66_v14 = vpop.xlane.xlu0 %65  ;;  %v72_v15 = vpop.xlane.xlu1 %71 }
  0xae   :  { %v75_v16 = vmul.f32 0.03125, %v66_v14  ;;  %v77_v17 = vmul.f32 0.03125, %v72_v15  ;;  %v82_v18 = vmul.f32 %v78_v12, %v78_v12  ;;  %v84_v19 = vmul.f32 %v80_v13, %v80_v13 }
  0xb0   :  { %v79_v20 = vsub.f32 %v55_v2, %v75_v16  ;;  %v81_v21 = vsub.f32 %v57_v5, %v77_v17  ;;  %v86_v22 = vsel %vm60_vm0, %v82_v18, 0.0  ;;  %v92_v23 = vsel %vm60_vm0, %v84_v19, 0.0 }
  0xb1   :  { %87 = vadd.xlane.f32.xlu0 %v86_v22 }
  0xb2   :  { %v83_v24 = vmul.f32 %v79_v20, %v79_v20  ;;  %v85_v25 = vmul.f32 %v81_v21, %v81_v21 }
  0xb4   :  { %v89_v26 = vsel %vm60_vm0, %v83_v24, 0.0  ;;  %v95_v27 = vsel %vm60_vm0, %v85_v25, 0.0 }
  0xb5   :  { %93 = vadd.xlane.f32.xlu0 %v92_v23  ;;  %90 = vadd.xlane.f32.xlu1 %v89_v26 }
  0xb9   :  { %96 = vadd.xlane.f32.xlu1 %v95_v27 }
 0x13a   :  { %v88_v30 = vpop.xlane.xlu0 %87 }
 0x13b   :  { %v98_v31 = vmul.f32 0.03125, %v88_v30 }
 0x13d   :  { %v102_v32 = vadd.f32 1e-05, %v98_v31 }
 0x13e   :  { %v91_v33 = vpop.xlane.xlu1 %90  ;;  %v94_v34 = vpop.xlane.xlu0 %93 }
 0x13f   :  { %355 = vrsqrt.f32 %v102_v32  ;;  %v99_v35 = vmul.f32 0.03125, %v91_v33  ;;  %v100_v36 = vmul.f32 0.03125, %v94_v34 }
 0x141   :  { %v103_v37 = vadd.f32 1e-05, %v99_v35  ;;  %v104_v38 = vadd.f32 1e-05, %v100_v36 }
 0x142   :  { %v97_v39 = vpop.xlane.xlu1 %96 }
 0x143   :  { %357 = vrsqrt.f32 %v103_v37  ;;  %v101_v40 = vmul.f32 0.03125, %v97_v39 }
 0x144   :  { %359 = vrsqrt.f32 %v104_v38 }
 0x145   :  { %v105_v41 = vadd.f32 1e-05, %v101_v40 }
 0x147   :  { %361 = vrsqrt.f32 %v105_v41 }
 0x14c   :  { %v356_v42 = vpop.eup %355 }
 0x14d   :  { %v110_v43 = vmul.f32 %v356_v42, %v78_v12 }
 0x14f   :  { %v120_v48 = vmul.f32 %v316_v44, %v110_v43 }
 0x150   :  { %v358_v45 = vpop.eup %357 }
 0x151   :  { %v360_v46 = vpop.eup %359  ;;  %v111_v47 = vmul.f32 %v358_v45, %v79_v20  ;;  %v130_v53 = vadd.f32 %v317_v49, %v120_v48 }
 0x152   :  { %v112_v50 = vmul.f32 %v360_v46, %v80_v13 }
 0x153   :  { %v121_v51 = vmul.f32 %v316_v44, %v111_v47 }
 0x154   :  { %v362_v52 = vpop.eup %361  ;;  %v122_v56 = vmul.f32 %v316_v44, %v112_v50 }
 0x155   :  { %v131_v54 = vadd.f32 %v317_v49, %v121_v51  ;;  %v113_v55 = vmul.f32 %v362_v52, %v81_v21 }
 0x156   :  { %v132_v59 = vadd.f32 %v317_v49, %v122_v56 }
 0x157   :  { %v134_v57 = vpack.c.bf16 %v131_v54, %v130_v53  ;;  %v123_v58 = vmul.f32 %v316_v44, %v113_v55 }
 0x159   :  { %339 = vmatprep.mubr.msk.bf16.mxu0 %vm60_vm0, %v134_v57  ;;  %v133_v60 = vadd.f32 %v317_v49, %v123_v58 }
 0x15b   :  { %v135_v61 = vpack.c.bf16 %v133_v60, %v132_v59 }
 0x15d   :  { %340 = vmatmul.mubr.msk.bf16.vlgmr.msra.gmra.mxu0 %vm60_vm0, %v135_v61 }
 0x21d   :  { %v341_v63 = vpop.f32.mrf.mxu0 }
 0x21e   :  { %v208_v0 = vadd.f32 %v341_v63, %v318_v62 }
 0x21f   :  { %v199_v1 = vpop.f32.mrf.mxu0 }
 0x220   :  { %v329_v2 = vpack.c.bf16 %v208_v0, %v208_v0  ;;  %v200_v3 = vadd.f32 %v318_v62, %v199_v1 }
 0x221   :  { %v342_v4 = vpop.f32.mrf.mxu0 }
 0x222   :  { %233 = vst.msk [vmem:[#allocation7 + $0x8] sm:$0xf] %vm230_vm1, %v329_v2  ;;  %v327_v5 = vpack.c.bf16 %v200_v3, %v200_v3  ;;  %v211_v6 = vadd.f32 %v342_v4, %v318_v62  ;;  %239 = vrot.lane.b32.xlu1 %v329_v2, %s477_s2 }
 0x223   :  { %v202_v7 = vpop.f32.mrf.mxu0 }
 0x224   :  { %231 = vst.msk [vmem:[#allocation7] sm:$0xf] %vm230_vm1, %v327_v5  ;;  %v330_v8 = vpack.c.bf16 %v211_v6, %v211_v6  ;;  %v203_v9 = vadd.f32 %v318_v62, %v202_v7  ;;  %235 = vrot.lane.b32.xlu0 %v327_v5, %s477_s2 }
 0x226   :  { %234 = vst.msk [vmem:[#allocation7 + $0xc] sm:$0xf] %vm230_vm1, %v330_v8  ;;  %v328_v10 = vpack.c.bf16 %v203_v9, %v203_v9  ;;  %241 = vrot.lane.b32.xlu1 %v330_v8, %s477_s2 }
 0x228   :  { %232 = vst.msk [vmem:[#allocation7 + $0x4] sm:$0xf] %vm230_vm1, %v328_v10  ;;  %251 = vrot.lane.b32.xlu0 %v327_v5, %s475_s11 }
 0x229   :  { %414 = shalt.err (!%p411_p0)
}
 0x22a   :  { %278 = dma.vmem_to_hbm [thread:$0]  %s273_s18, 256, %s588_s5, [#allocation4], %s475_s11, %s475_s11, %s476_s12  }
 0x22b   :  { %237 = vrot.lane.b32.xlu1 %v328_v10, %s477_s2  ;;  %s479_s22 = smov [#allocation8]  }
 0x22c   :  { %255 = vrot.lane.b32.xlu0 %v329_v2, %s475_s11  ;;  %s284_s23 = sshll.u32 %s479_s22, 4  ;;  %s285_s23 = int_to_ptr.vmem [resolvable:$true] %s284_s23 }
 0x22d   :  { %s423_s5 = scalar_lea.vmem %s285_s23, 256  ;;  %p428_p2 = scmp.lt.s32.totalorder %s285_s23, %s285_s23 }
 0x22e   :  { %p424_p1 = scmp.ne.s32.totalorder %s285_s23, %s423_s5  ;;  %p429_p3 = scmp.lt.s32.totalorder %s423_s5, %s423_s5 }
 0x22f   :  { %253 = vrot.lane.b32.xlu1 %v328_v10, %s475_s11 }
 0x230   :  { %p430_p4 = por %p429_p3, %p428_p2 }
 0x232   :  { %p431_p5 = pnand %p430_p4, %p424_p1 }
 0x233   :  { %257 = vrot.lane.b32.xlu1 %v330_v8, %s475_s11 }
 0x294   :  { %v240_v11 = vpop.permute.xlu1 %239 }
 0x295   :  { %249 = vst.msk [vmem:[#allocation8 + $0x8] sm:$0xf] %vm230_vm1, %v240_v11 }
 0x296   :  { %v236_v12 = vpop.permute.xlu0 %235 }
 0x297   :  { %247 = vst.msk [vmem:[#allocation8] sm:$0xf] %vm230_vm1, %v236_v12 }
 0x298   :  { %v242_v13 = vpop.permute.xlu1 %241 }
 0x299   :  { %250 = vst.msk [vmem:[#allocation8 + $0xc] sm:$0xf] %vm230_vm1, %v242_v13 }
 0x29a   :  { %v252_v14 = vpop.permute.xlu0 %251 }
 0x29b   :  { %263 = vst.msk [vmem:[#allocation10] sm:$0xf] %vm230_vm1, %v252_v14 }
 0x29d   :  { %v238_v15 = vpop.permute.xlu1 %237 }
 0x29e   :  { %248 = vst.msk [vmem:[#allocation8 + $0x4] sm:$0xf] %vm230_vm1, %v238_v15  ;;  %v256_v16 = vpop.permute.xlu0 %255 }
 0x29f   :  { %434 = shalt.err (!%p431_p5)
}
 0x2a0   :  { %290 = dma.vmem_to_hbm [thread:$0]  %s285_s23, 256, %s589_s6, [#allocation9], %s475_s11, %s475_s11, %s476_s12   ;;  %265 = vst.msk [vmem:[#allocation10 + $0x8] sm:$0xf] %vm230_vm1, %v256_v16 }
 0x2a1   :  { %v254_v17 = vpop.permute.xlu1 %253  ;;  %s480_s26 = smov [#allocation10]  }
 0x2a2   :  { %s296_s27 = sshll.u32 %s480_s26, 4  ;;  %264 = vst.msk [vmem:[#allocation10 + $0x4] sm:$0xf] %vm230_vm1, %v254_v17  ;;  %s297_s27 = int_to_ptr.vmem [resolvable:$true] %s296_s27 }
 0x2a3   :  { %s443_s28 = scalar_lea.vmem %s297_s27, 256  ;;  %p448_p7 = scmp.lt.s32.totalorder %s297_s27, %s297_s27 }
 0x2a4   :  { %p444_p6 = scmp.ne.s32.totalorder %s297_s27, %s443_s28  ;;  %p449_p8 = scmp.lt.s32.totalorder %s443_s28, %s443_s28 }
 0x2a5   :  { %v258_v18 = vpop.permute.xlu1 %257 }
 0x2a6   :  { %266 = vst.msk [vmem:[#allocation10 + $0xc] sm:$0xf] %vm230_vm1, %v258_v18  ;;  %p450_p9 = por %p449_p8, %p448_p7 }
 0x2a8   :  { %p451_p10 = pnand %p450_p9, %p444_p6 }
 0x2aa   :  { %454 = shalt.err (!%p451_p10)
}
 0x2ab   :  { %302 = dma.vmem_to_hbm [thread:$0]  %s297_s27, 256, %s590_s7, [#allocation9], %s475_s11, %s475_s11, %s476_s12  }
 0x2ac   :  { %467 = dma.done.wait [#allocation4], 256  }
 0x2ad   :  { %468 = vsyncadd [#allocation4], 4294967040 }
 0x2ae   :  { %469 = dma.done.wait [#allocation9], 512  }
 0x2af   :  { %470 = vsyncadd [#allocation9], 4294966784 }
 0x2b0   :  { %312 = vsyncpa [#allocation3], 1 }
 0x2b1   :  { %313 = vsyncpa [#allocation6], 1 }
 0x2b2   :  { %314 = vsyncpa [#allocation4], 1 }
 0x2b3   :  { %315 = vsyncpa [#allocation9], 1 }

</bundles_post_ra>
